<compile_context>
chip_gen: v7x
topology: tpu7x:2x2x1
jax: 0.10.0
libtpu: 0.0.40
codegen_flags: <defaults>
</compile_context>

<pallas_src>
import math

import jax
import jax.numpy as jnp
from jax.experimental import pallas as pl
from jax.experimental.pallas import tpu as pltpu


def _round_up(n, m):
    return ((n + m - 1) // m) * m


def _pick_tile(dim, candidates):
    """Largest candidate that evenly divides `dim`; fall back to the full dim."""
    for c in candidates:
        if dim >= c and dim % c == 0:
            return c
    return dim


# ----------------------------- kernels -------------------------------------


def conv1d_kernel_fused(x_ref, w_ref, b_ref, o_ref):
    # Single K tile: matmul + bias add straight into the output tile.
    # x_ref: (tm, K)   w_ref: (K, tn)   b_ref: (1, tn) f32   o_ref: (tm, tn)
    acc = jnp.dot(x_ref[...], w_ref[...], preferred_element_type=jnp.float32)
    o_ref[...] = (acc + b_ref[...]).astype(o_ref.dtype)


def conv1d_kernel_acc(x_ref, w_ref, b_ref, o_ref, acc_ref):
    # K tiled: accumulate partial products in f32 scratch, finalize on last k.
    k = pl.program_id(2)

    @pl.when(k == 0)
    def _():
        acc_ref[...] = jnp.zeros_like(acc_ref)

    acc_ref[...] += jnp.dot(x_ref[...], w_ref[...], preferred_element_type=jnp.float32)

    @pl.when(k == pl.num_programs(2) - 1)
    def _():
        o_ref[...] = (acc_ref[...] + b_ref[...]).astype(o_ref.dtype)


# ----------------------------- wrapper --------------------------------------


def conv1d_forward(x, weight, bias, *, tm=256, tn=None, tk=None, use_bf16_matmul=True):
    """Conv1D forward: x[..., K] @ weight[K, O] + bias[O] -> [..., O]."""
    *lead, K = x.shape
    O = weight.shape[1]
    M = math.prod(lead) if lead else 1

    out_dtype = x.dtype
    compute_dtype = jnp.bfloat16 if use_bf16_matmul else x.dtype
    itm = jnp.dtype(compute_dtype).itemsize
    out_itm = jnp.dtype(out_dtype).itemsize

    # Row tile: as large as requested but never bigger than the (8-aligned)
    # row count; pad M up to a multiple of the tile -> unmasked, dense stores.
    tm_eff = min(tm, _round_up(M, 8))
    M_pad = _round_up(M, tm_eff)

    # Feature / reduction tiles: keep full dims when small (one resident
    # block), tile by multiples of 128 when large so weight streams through
    # VMEM instead of being forced resident (matters for v7x's 64 MiB VMEM).
    tn_eff = tn if tn is not None else _pick_tile(O, (1024, 512, 256)) if O > 1024 else O
    tk_eff = tk if tk is not None else _pick_tile(K, (1024, 512, 256)) if K > 1024 else K

    nm = M_pad // tm_eff
    nn = O // tn_eff
    nk = K // tk_eff
    grid = (nm, nn, nk)

    x2d = x.reshape(M, K)
    if M_pad != M:
        x2d = jnp.pad(x2d, ((0, M_pad - M), (0, 0)))

    x_in = x2d.astype(compute_dtype)
    w_in = weight.astype(compute_dtype)
    b_in = bias.reshape(1, O).astype(jnp.float32)

    in_specs = [
        pl.BlockSpec((tm_eff, tk_eff), lambda i, j, k: (i, k)),  # x row/K tile
        pl.BlockSpec((tk_eff, tn_eff), lambda i, j, k: (k, j)),  # weight tile
        pl.BlockSpec((1, tn_eff), lambda i, j, k: (0, j)),       # bias tile (f32)
    ]
    out_specs = pl.BlockSpec((tm_eff, tn_eff), lambda i, j, k: (i, j))

    if nk == 1:
        kernel = conv1d_kernel_fused
        scratch_shapes = []
        acc_bytes = 0
    else:
        kernel = conv1d_kernel_acc
        scratch_shapes = [pltpu.VMEM((tm_eff, tn_eff), jnp.float32)]
        acc_bytes = tm_eff * tn_eff * 4

    # Advisory cost estimate so XLA schedules surrounding HLO around this op.
    cost = pl.CostEstimate(
        flops=2 * M_pad * K * O,
        transcendentals=0,
        bytes_accessed=(M_pad * K * itm * nn)     # x re-read per N tile
        + (K * O * itm * nm)                      # weight re-read per M tile
        + (O * 4 * nm)                            # bias
        + (M_pad * O * out_itm),                  # output
    )

    # Rough VMEM need: double-buffered x/w/bias/out tiles + f32 accumulator.
    vmem_need = (
        2 * tm_eff * tk_eff * itm
        + 2 * tk_eff * tn_eff * itm
        + 2 * tn_eff * 4
        + 2 * tm_eff * tn_eff * out_itm
        + acc_bytes
    )
    vmem_limit = int(min(max(2 * vmem_need, 32 * 1024 * 1024), 60 * 1024 * 1024))

    out2d = pl.pallas_call(
        kernel,
        out_shape=jax.ShapeDtypeStruct((M_pad, O), out_dtype),
        grid_spec=pltpu.PrefetchScalarGridSpec(
            num_scalar_prefetch=0,
            grid=grid,
            in_specs=in_specs,
            out_specs=out_specs,
            scratch_shapes=scratch_shapes,
        ),
        compiler_params=pltpu.CompilerParams(
            dimension_semantics=("parallel", "parallel", "arbitrary"),
            vmem_limit_bytes=vmem_limit,
        ),
        cost_estimate=cost,
    )(x_in, w_in, b_in)

    if M_pad != M:
        out2d = out2d[:M]
    return out2d.reshape(*lead, O)


def conv1d_ref(x, weight, bias):
    """Pure-JAX reference: torch.nn.functional.linear(x, W.T, b) == x @ W + b."""
    return x @ weight + bias


if __name__ == "__main__":
    # Small shapes consistent with the module: batch=2, seq=8, input_dim=32, out_dim=128.
    B, S, E, O = 2, 8, 32, 128

    key = jax.random.PRNGKey(0)
    kx, kw, kb = jax.random.split(key, 3)

    # Conv1D init: normal(std=0.02) weight.  (The module zeroes the bias; a small
    # nonzero bias is used here so the bias-add path is actually exercised.)
    weight = (0.02 * jax.random.normal(kw, (E, O))).astype(jnp.float32)
    bias = (0.02 * jax.random.normal(kb, (O,))).astype(jnp.float32)
    x = jax.random.normal(kx, (B, S, E), jnp.float32)

    ref = conv1d_ref(x, weight, bias)

    # bf16-operand / f32-accumulate fast path (default, single K/N tile -> fused kernel).
    out = jax.block_until_ready(conv1d_forward(x, weight, bias))
    assert out.shape == (B, S, O)
    assert jnp.allclose(out, ref, atol=1e-2, rtol=1e-2), "bf16 path mismatch vs reference"

    # Full-f32 path, tight tolerance.
    out_f32 = jax.block_until_ready(conv1d_forward(x, weight, bias, use_bf16_matmul=False))
    assert jnp.allclose(out_f32, ref, atol=1e-5, rtol=1e-5), "f32 path mismatch vs reference"

    # Ragged row count (M not a multiple of 8) to exercise the pad/slice tail path.
    x_odd = jax.random.normal(kx, (3, 5, E), jnp.float32)
    out_odd = jax.block_until_ready(conv1d_forward(x_odd, weight, bias))
    assert jnp.allclose(out_odd, conv1d_ref(x_odd, weight, bias), atol=1e-2, rtol=1e-2), \
        "ragged-M path mismatch vs reference"

    # Forced K/N tiling to exercise the 3-D grid + f32 accumulator path.
    K2, O2 = 256, 256
    w2 = (0.02 * jax.random.normal(kw, (K2, O2))).astype(jnp.float32)
    b2 = (0.02 * jax.random.normal(kb, (O2,))).astype(jnp.float32)
    x2 = jax.random.normal(kx, (4, 8, K2), jnp.float32)
    out2 = jax.block_until_ready(conv1d_forward(x2, w2, b2, tk=128, tn=128))
    assert jnp.allclose(out2, conv1d_ref(x2, w2, b2), atol=1e-2, rtol=1e-2), \
        "K-tiled accumulator path mismatch vs reference"

    print("KERNEL_OK")
</pallas_src>

<mosaic_0001>
module attributes {stable_mosaic.version = 11 : i64} {
  func.func @conv1d_kernel_fused(%arg0: i32, %arg1: i32, %arg2: i32, %arg3: memref<16x32xbf16, #tpu.memory_space<vmem>>, %arg4: memref<32x128xbf16, #tpu.memory_space<vmem>>, %arg5: memref<1x128xf32, #tpu.memory_space<vmem>>, %arg6: memref<16x128xf32, #tpu.memory_space<vmem>>) attributes {dimension_semantics = [#tpu.dimension_semantics<parallel>, #tpu.dimension_semantics<parallel>, #tpu.dimension_semantics<arbitrary>], iteration_bounds = array<i64: 1, 1, 1>, scalar_prefetch = 0 : i64, scratch_operands = 0 : i64, tpu.core_type = #tpu.core_type<tc>, window_params = [{transform_indices = @transform_0, window_bounds = array<i64: 16, 32>}, {transform_indices = @transform_1, window_bounds = array<i64: 32, 128>}, {transform_indices = @transform_2, window_bounds = array<i64: 1, 128>}, {transform_indices = @transform_3, window_bounds = array<i64: 16, 128>}]} {
    %c0 = arith.constant 0 : index
    %c0_0 = arith.constant 0 : index
    %0 = vector.load %arg3[%c0, %c0_0] : memref<16x32xbf16, #tpu.memory_space<vmem>>, vector<16x32xbf16>
    %c0_1 = arith.constant 0 : index
    %c0_2 = arith.constant 0 : index
    %1 = vector.load %arg4[%c0_1, %c0_2] : memref<32x128xbf16, #tpu.memory_space<vmem>>, vector<32x128xbf16>
    %cst = arith.constant dense<0.000000e+00> : vector<16x128xf32>
    %2 = tpu.matmul %0, %1, %cst {dimension_numbers = #tpu.dot_dimension_numbers<[1], [0], [0], [1], [0, 0, 1, 1], [], []>} : vector<16x32xbf16>, vector<32x128xbf16>, vector<16x128xf32> -> vector<16x128xf32>
    %c0_3 = arith.constant 0 : index
    %c0_4 = arith.constant 0 : index
    %3 = vector.load %arg5[%c0_3, %c0_4] : memref<1x128xf32, #tpu.memory_space<vmem>>, vector<1x128xf32>
    %4 = vector.broadcast %3 : vector<1x128xf32> to vector<16x128xf32>
    %5 = arith.addf %2, %4 : vector<16x128xf32>
    %c0_5 = arith.constant 0 : index
    %c0_6 = arith.constant 0 : index
    %6 = vector.load %arg6[%c0_5, %c0_6] : memref<16x128xf32, #tpu.memory_space<vmem>>, vector<16x128xf32>
    tpu.vector_store %arg6[%c0_5, %c0_6], %5 {strides = array<i32>} : memref<16x128xf32, #tpu.memory_space<vmem>>, vector<16x128xf32>,
    return
  }
  func.func @transform_0(%arg0: i32, %arg1: i32, %arg2: i32) -> (i32, i32) {
    %c0_i32 = arith.constant 0 : i32
    return %arg0, %arg2 : i32, i32
  }
  func.func @transform_1(%arg0: i32, %arg1: i32, %arg2: i32) -> (i32, i32) {
    %c0_i32 = arith.constant 0 : i32
    return %arg2, %arg1 : i32, i32
  }
  func.func @transform_2(%arg0: i32, %arg1: i32, %arg2: i32) -> (i32, i32) {
    %c0_i32 = arith.constant 0 : i32
    %c0_i32_0 = arith.constant 0 : i32
    return %c0_i32, %arg1 : i32, i32
  }
  func.func @transform_3(%arg0: i32, %arg1: i32, %arg2: i32) -> (i32, i32) {
    %c0_i32 = arith.constant 0 : i32
    return %arg0, %arg1 : i32, i32
  }
}

</mosaic_0001>

<bundles_post_ra>
// kernel: tpu_custom_call.1
= control target key start
LH: loop header
LB: loop body
LE: loop exit
PB: predicated region body
PF: predicated region fallthrough
CT: control target
= control target key end

     0   :  { %8 = vsyncpa [#allocation3], 0  ;;  %s307_s0 = inlined_call_operand.hbm [shape: bf16[16,32], index: 0, kind: input, shape index: {}]   ;;  %s308_s1 = inlined_call_operand.hbm [shape: bf16[32,128], index: 1, kind: input, shape index: {}]   ;;  %s309_s2 = inlined_call_operand.vmem [shape: f32[1,128], index: 2, kind: input, shape index: {}]   ;;  %s310_s3 = inlined_call_operand.hbm [shape: f32[16,128], index: 3, kind: output, shape index: {}]  }
   0x1   :  { %9 = vsyncpa [#allocation6], 0 }
   0x2   :  { %10 = vsyncpa [#allocation4], 0  ;;  %s239_s12 = smov [#allocation2]   ;;  %s167_s16 = scalar_lea.hbm %s307_s0, 128 }
   0x3   :  { %s16_s13 = sshll.u32 %s239_s12, 4  ;;  %p168_p0 = scmp.ne.s32.totalorder %s307_s0, %s167_s16  ;;  %s17_s13 = int_to_ptr.vmem [resolvable:$true] %s16_s13 }
   0x4   :  { %p171_p1 = scmp.lt.u32.totalorder %s167_s16, %s307_s0 }
   0x6   :  { %p173_p2 = pnand %p171_p1, %p168_p0 }
   0x8   :  { %176 = shalt.err (!%p173_p2)
}
   0x9   :  { %s177_s21 = scalar_lea.vmem %s17_s13, 128  ;;  %p182_p4 = scmp.lt.s32.totalorder %s17_s13, %s17_s13 }
   0xa   :  { %p178_p3 = scmp.ne.s32.totalorder %s17_s13, %s177_s21  ;;  %p183_p5 = scmp.lt.s32.totalorder %s177_s21, %s177_s21 }
   0xc   :  { %p184_p6 = por %p183_p5, %p182_p4 }
   0xe   :  { %p185_p7 = pnand %p184_p6, %p178_p3 }
  0x10   :  { %188 = shalt.err (!%p185_p7)
}
  0x11   :  { %s240_s22 = smov 64   ;;  %s241_s23 = smov 4  }
  0x12   :  { %22 = dma.hbm_to_vmem [thread:$0]  %s307_s0, 128, %s17_s13, [#allocation3], %s240_s22, %s240_s22, %s241_s23  }
  0x13   :  { %s242_s26 = smov [#allocation5]   ;;  %s189_s30 = scalar_lea.hbm %s308_s1, 256 }
  0x14   :  { %s28_s27 = sshll.u32 %s242_s26, 4  ;;  %p190_p8 = scmp.ne.s32.totalorder %s308_s1, %s189_s30  ;;  %s29_s27 = int_to_ptr.vmem [resolvable:$true] %s28_s27 }
  0x15   :  { %p193_p9 = scmp.lt.u32.totalorder %s189_s30, %s308_s1 }
  0x17   :  { %p195_p10 = pnand %p193_p9, %p190_p8 }
  0x19   :  { %198 = shalt.err (!%p195_p10)
}
  0x1a   :  { %s199_s8 = scalar_lea.vmem %s29_s27, 256  ;;  %p204_p12 = scmp.lt.s32.totalorder %s29_s27, %s29_s27 }
  0x1b   :  { %p200_p11 = scmp.ne.s32.totalorder %s29_s27, %s199_s8  ;;  %p205_p13 = scmp.lt.s32.totalorder %s199_s8, %s199_s8 }
  0x1d   :  { %p206_p0 = por %p205_p13, %p204_p12 }
  0x1f   :  { %p207_p1 = pnand %p206_p0, %p200_p11 }
  0x21   :  { %210 = shalt.err (!%p207_p1)
}
  0x22   :  { %34 = dma.hbm_to_vmem [thread:$0]  %s308_s1, 256, %s29_s27, [#allocation6], %s240_s22, %s240_s22, %s241_s23  }
  0x23   :  { %233 = dma.done.wait [#allocation3], 128  }
  0x24   :  { %234 = vsyncadd [#allocation3], 4294967168 }
  0x25   :  { %235 = dma.done.wait [#allocation6], 256  }
  0x26   :  { %236 = vsyncadd [#allocation6], 4294967040  ;;  %v243_v0 = vmov 0.0   ;;  %vm244_vm0 = vmmov 0   ;;  %v164_v1 = vld [vmem:[#allocation5] sm:$0xff]   ;;  %v165_v2 = vld [vmem:[#allocation5 + $0x8] sm:$0xff]  }
  0x27   :  { %147 = vmatprep.subr.bf16.mxu0 %v243_v0  ;;  %151 = vmatprep.mubr.msk.bf16.mxu0 %vm244_vm0, %v243_v0  ;;  %v166_v3 = vld [vmem:[#allocation2] sm:$0xff]   ;;  %vm74_vm1 = vcmask 261120   ;;  %s245_s1 = smov [#allocation7]  }
  0x28   :  { %148 = vmatpush3.bf16.msra.mxu0 %v164_v1  ;;  %v139_v4 = vld [vmem:[%s309_s2] ss:$0 sm:$0xff]  ;;  %s126_s12 = sshll.u32 %s245_s1, 4  ;;  %s127_s12 = int_to_ptr.vmem [resolvable:$true] %s126_s12 }
  0x29   :  { %149 = vmatprep.subr.bf16.mxu0 %v243_v0  ;;  %s211_s13 = scalar_lea.vmem %s127_s12, 256  ;;  %p216_p3 = scmp.lt.s32.totalorder %s127_s12, %s127_s12 }
  0x2a   :  { %p212_p2 = scmp.ne.s32.totalorder %s127_s12, %s211_s13  ;;  %p217_p4 = scmp.lt.s32.totalorder %s211_s13, %s211_s13 }
  0x2c   :  { %150 = vmatpush3.bf16.msra.mxu0 %v165_v2  ;;  %p218_p5 = por %p217_p4, %p216_p3 }
  0x2e   :  { %p219_p6 = pnand %p218_p5, %p212_p2 }
  0x2f   :  { %152 = vmatmul.mubr.msk.bf16.vlgmr.msra.gmra.mrb[0].mxu0 %vm74_vm1, %v166_v3 }
 0x102   :  { %v112_v5 = vpop.f32.mrb[0].mxu0 }
 0x103   :  { %v113_v6 = vadd.f32 %v139_v4, %v112_v5  ;;  %v153_v7 = vpop.f32.mrb[1].mxu0 }
 0x104   :  { %v115_v8 = vpop.f32.mrb[2].mxu0 }
 0x105   :  { %119 = vst [vmem:[#allocation7] sm:$0xff] %v113_v6  ;;  %v116_v9 = vadd.f32 %v139_v4, %v115_v8  ;;  %v154_v10 = vpop.f32.mrb[3].mxu0 }
 0x107   :  { %120 = vst [vmem:[#allocation7 + $0x8] sm:$0xff] %v116_v9 }
 0x108   :  { %222 = shalt.err (!%p219_p6)
}
 0x109   :  { %s223_s15 = scalar_lea.hbm %s310_s3, 256 }
 0x10a   :  { %p224_p7 = scmp.ne.s32.totalorder %s310_s3, %s223_s15  ;;  %p227_p8 = scmp.lt.u32.totalorder %s223_s15, %s310_s3 }
 0x10c   :  { %p229_p9 = pnand %p227_p8, %p224_p7 }
 0x10e   :  { %232 = shalt.err (!%p229_p9)
}
 0x10f   :  { %s246_s20 = smov 128   ;;  %s247_s21 = smov 8  }
 0x110   :  { %132 = dma.vmem_to_hbm [thread:$0]  %s127_s12, 256, %s310_s3, [#allocation4], %s246_s20, %s246_s20, %s247_s21  }
 0x111   :  { %237 = dma.done.wait [#allocation4], 256  }
 0x112   :  { %238 = vsyncadd [#allocation4], 4294967040 }
 0x113   :  { %136 = vsyncpa [#allocation3], 1 }
 0x114   :  { %137 = vsyncpa [#allocation6], 1 }
 0x115   :  { %138 = vsyncpa [#allocation4], 1 }

</bundles_post_ra>
